<compile_context>
chip_gen: v6e
topology: v6e:2x2x1
jax: 0.10.0
libtpu: 0.0.40
codegen_flags: <defaults>
</compile_context>

<pallas_src>
from collections import OrderedDict

import jax
import jax.numpy as jnp
from jax.experimental import pallas as pl
from jax.experimental.pallas import tpu as pltpu


def extract_embeds(targets):
    # torch.cat([t['country'] for t in targets]).long(); int32 is sufficient here.
    return jnp.concatenate([t["country"] for t in targets]).astype(jnp.int32)


def _make_embed_concat_kernel(n, num_levels):
    """Kernel handling all feature levels for one batch element per grid step.

    Args (in order): t_ref (SMEM, (B,) int32 scalar-prefetch),
                     feat refs  (1, C_k, H_k*W_k) for each level,
                     out  refs  (1, n + C_k, H_k*W_k) for each level.
    """

    def kernel(t_ref, *refs):
        feat_refs = refs[:num_levels]
        out_refs = refs[num_levels:]
        tid = t_ref[pl.program_id(0)]  # country id of this batch element
        for feat_ref, out_ref in zip(feat_refs, out_refs):
            hw = feat_ref.shape[-1]
            # One-hot embedding channels == embeds[t] broadcast over H*W.
            ch = jax.lax.broadcasted_iota(jnp.int32, (n, hw), 0)
            out_ref[0, :n, :] = (ch == tid).astype(out_ref.dtype)
            # torch.cat([..., feat], dim=1): copy feature channels after them.
            out_ref[0, n:, :] = feat_ref[0]

    return kernel


def _embed_concat_fused(t, feats, n):
    """t: (B,) int32 ids.  feats: list of (B, C_k, H_k, W_k) arrays.

    Returns a list of (B, n + C_k, H_k, W_k) arrays (same order as `feats`).
    """
    num_levels = len(feats)
    b = feats[0].shape[0]

    # Lane-dense view: flatten (H, W) -> H*W (contiguous, zero-cost reshape).
    flats = [f.reshape(f.shape[0], f.shape[1], f.shape[2] * f.shape[3]) for f in feats]

    in_specs = []
    out_specs = []
    out_shapes = []
    for f, orig in zip(flats, feats):
        _, c, hw = f.shape
        # Last two block dims equal the full array dims -> always legal.
        in_specs.append(pl.BlockSpec((1, c, hw), lambda i, t_ref: (i, 0, 0)))
        out_specs.append(pl.BlockSpec((1, n + c, hw), lambda i, t_ref: (i, 0, 0)))
        out_shapes.append(jax.ShapeDtypeStruct((b, n + c, hw), orig.dtype))

    kernel = _make_embed_concat_kernel(n, num_levels)

    outs = pl.pallas_call(
        kernel,
        out_shape=tuple(out_shapes),
        grid_spec=pltpu.PrefetchScalarGridSpec(
            num_scalar_prefetch=1,
            grid=(b,),
            in_specs=in_specs,
            out_specs=tuple(out_specs),
        ),
        compiler_params=pltpu.CompilerParams(
            dimension_semantics=("parallel",),
        ),
    )(t, *flats)

    # Reshape each output back to NCHW (contiguous -> free view).
    return [
        o.reshape(f.shape[0], n + f.shape[1], f.shape[2], f.shape[3])
        for o, f in zip(outs, feats)
    ]


class EmbedPallas:
    """JAX/Pallas port of the PyTorch `Embed` module."""

    def __init__(self, n):
        self.n = n
        # register_buffer('embeds', torch.eye(n)) — kept for parity; the kernel
        # regenerates the identical one-hot rows in-kernel from the index.
        self.embeds = jnp.eye(n, dtype=jnp.float32)

    def __call__(self, features, tgts):
        assert len(tgts) == features["0"].shape[0]
        t = extract_embeds(tgts)
        keys = list(features.keys())
        feats = [features[k] for k in keys]
        outs = _embed_concat_fused(t, feats, self.n)
        return OrderedDict(zip(keys, outs))


if __name__ == "__main__":
    n = 4  # number of "countries" / embedding size
    B = 2  # batch
    C = 4  # feature channels

    key = jax.random.PRNGKey(0)
    k1, k2, k3 = jax.random.split(key, 3)

    # Multi-level feature dict (like an FPN output), NCHW float32.
    features = OrderedDict(
        [
            ("0", jax.random.normal(k1, (B, C, 16, 16), dtype=jnp.float32)),
            ("1", jax.random.normal(k2, (B, C, 8, 8), dtype=jnp.float32)),
        ]
    )
    country_ids = jax.random.randint(k3, (B,), 0, n)
    tgts = [{"country": country_ids[i : i + 1]} for i in range(B)]

    model = EmbedPallas(n)
    out = model(features, tgts)
    out = jax.tree_util.tree_map(jax.block_until_ready, out)

    # Pure-JAX reference check of the forward semantics.
    t = extract_embeds(tgts)
    emb_ref = jnp.eye(n, dtype=jnp.float32)[t][:, :, None, None]
    ok = True
    for k, feat in features.items():
        h, w = feat.shape[-2:]
        ref = jnp.concatenate(
            [jnp.broadcast_to(emb_ref, (B, n, h, w)), feat], axis=1
        )
        ok &= out[k].shape == (B, n + C, h, w)
        ok &= bool(jnp.allclose(out[k], ref, atol=0.0, rtol=0.0))
    assert ok, "Pallas output mismatch vs reference"

    print("KERNEL_OK")
</pallas_src>

<mosaic_0001>
module attributes {stable_mosaic.version = 11 : i64} {
  func.func @kernel(%arg0: i32, %arg1: memref<2xi32, #tpu.memory_space<smem>>, %arg2: memref<1x4x256xf32, #tpu.memory_space<vmem>>, %arg3: memref<1x4x64xf32, #tpu.memory_space<vmem>>, %arg4: memref<1x8x256xf32, #tpu.memory_space<vmem>>, %arg5: memref<1x8x64xf32, #tpu.memory_space<vmem>>) attributes {dimension_semantics = [#tpu.dimension_semantics<parallel>], iteration_bounds = array<i64: 2>, scalar_prefetch = 1 : i64, scratch_operands = 0 : i64, tpu.core_type = #tpu.core_type<tc>, window_params = [{transform_indices = @transform_0, window_bounds = array<i64: 1, 4, 256>}, {transform_indices = @transform_1, window_bounds = array<i64: 1, 4, 64>}, {transform_indices = @transform_2, window_bounds = array<i64: 1, 8, 256>}, {transform_indices = @transform_3, window_bounds = array<i64: 1, 8, 64>}]} {
    %0 = arith.index_cast %arg0 : i32 to index
    %1 = memref.load %arg1[%0] : memref<2xi32, #tpu.memory_space<smem>>
    %2 = tpu.iota {dimensions = array<i32: 0>} : vector<4x256xi32>
    %3 = vector.broadcast %1 : i32 to vector<4x256xi32>
    %4 = arith.cmpi eq, %2, %3 : vector<4x256xi32>
    %5 = arith.extui %4 : vector<4x256xi1> to vector<4x256xi32>
    %6 = arith.sitofp %5 : vector<4x256xi32> to vector<4x256xf32>
    %c0 = arith.constant 0 : index
    %c0_0 = arith.constant 0 : index
    %c0_1 = arith.constant 0 : index
    %7 = vector.load %arg4[%c0, %c0_0, %c0_1] : memref<1x8x256xf32, #tpu.memory_space<vmem>>, vector<1x4x256xf32>
    %8 = vector.shape_cast %7 : vector<1x4x256xf32> to vector<4x256xf32>
    %9 = vector.shape_cast %6 : vector<4x256xf32> to vector<1x4x256xf32>
    tpu.vector_store %arg4[%c0, %c0_0, %c0_1], %9 {strides = array<i32>} : memref<1x8x256xf32, #tpu.memory_space<vmem>>, vector<1x4x256xf32>,
    %c0_2 = arith.constant 0 : index
    %c0_3 = arith.constant 0 : index
    %c0_4 = arith.constant 0 : index
    %10 = vector.load %arg2[%c0_2, %c0_3, %c0_4] : memref<1x4x256xf32, #tpu.memory_space<vmem>>, vector<1x4x256xf32>
    %11 = vector.shape_cast %10 : vector<1x4x256xf32> to vector<4x256xf32>
    %c0_5 = arith.constant 0 : index
    %c4 = arith.constant 4 : index
    %c0_6 = arith.constant 0 : index
    %12 = vector.load %arg4[%c0_5, %c4, %c0_6] : memref<1x8x256xf32, #tpu.memory_space<vmem>>, vector<1x4x256xf32>
    %13 = vector.shape_cast %12 : vector<1x4x256xf32> to vector<4x256xf32>
    %14 = vector.shape_cast %11 : vector<4x256xf32> to vector<1x4x256xf32>
    tpu.vector_store %arg4[%c0_5, %c4, %c0_6], %14 {strides = array<i32>} : memref<1x8x256xf32, #tpu.memory_space<vmem>>, vector<1x4x256xf32>,
    %15 = tpu.iota {dimensions = array<i32: 0>} : vector<4x64xi32>
    %16 = vector.broadcast %1 : i32 to vector<4x64xi32>
    %17 = arith.cmpi eq, %15, %16 : vector<4x64xi32>
    %18 = arith.extui %17 : vector<4x64xi1> to vector<4x64xi32>
    %19 = arith.sitofp %18 : vector<4x64xi32> to vector<4x64xf32>
    %c0_7 = arith.constant 0 : index
    %c0_8 = arith.constant 0 : index
    %c0_9 = arith.constant 0 : index
    %20 = vector.load %arg5[%c0_7, %c0_8, %c0_9] : memref<1x8x64xf32, #tpu.memory_space<vmem>>, vector<1x4x64xf32>
    %21 = vector.shape_cast %20 : vector<1x4x64xf32> to vector<4x64xf32>
    %22 = vector.shape_cast %19 : vector<4x64xf32> to vector<1x4x64xf32>
    tpu.vector_store %arg5[%c0_7, %c0_8, %c0_9], %22 {strides = array<i32>} : memref<1x8x64xf32, #tpu.memory_space<vmem>>, vector<1x4x64xf32>,
    %c0_10 = arith.constant 0 : index
    %c0_11 = arith.constant 0 : index
    %c0_12 = arith.constant 0 : index
    %23 = vector.load %arg3[%c0_10, %c0_11, %c0_12] : memref<1x4x64xf32, #tpu.memory_space<vmem>>, vector<1x4x64xf32>
    %24 = vector.shape_cast %23 : vector<1x4x64xf32> to vector<4x64xf32>
    %c0_13 = arith.constant 0 : index
    %c4_14 = arith.constant 4 : index
    %c0_15 = arith.constant 0 : index
    %25 = vector.load %arg5[%c0_13, %c4_14, %c0_15] : memref<1x8x64xf32, #tpu.memory_space<vmem>>, vector<1x4x64xf32>
    %26 = vector.shape_cast %25 : vector<1x4x64xf32> to vector<4x64xf32>
    %27 = vector.shape_cast %24 : vector<4x64xf32> to vector<1x4x64xf32>
    tpu.vector_store %arg5[%c0_13, %c4_14, %c0_15], %27 {strides = array<i32>} : memref<1x8x64xf32, #tpu.memory_space<vmem>>, vector<1x4x64xf32>,
    return
  }
  func.func @transform_0(%arg0: i32, %arg1: memref<2xi32, #tpu.memory_space<smem>>) -> (i32, i32, i32) {
    %c0_i32 = arith.constant 0 : i32
    %c0_i32_0 = arith.constant 0 : i32
    %c0_i32_1 = arith.constant 0 : i32
    return %arg0, %c0_i32, %c0_i32_0 : i32, i32, i32
  }
  func.func @transform_1(%arg0: i32, %arg1: memref<2xi32, #tpu.memory_space<smem>>) -> (i32, i32, i32) {
    %c0_i32 = arith.constant 0 : i32
    %c0_i32_0 = arith.constant 0 : i32
    %c0_i32_1 = arith.constant 0 : i32
    return %arg0, %c0_i32, %c0_i32_0 : i32, i32, i32
  }
  func.func @transform_2(%arg0: i32, %arg1: memref<2xi32, #tpu.memory_space<smem>>) -> (i32, i32, i32) {
    %c0_i32 = arith.constant 0 : i32
    %c0_i32_0 = arith.constant 0 : i32
    %c0_i32_1 = arith.constant 0 : i32
    return %arg0, %c0_i32, %c0_i32_0 : i32, i32, i32
  }
  func.func @transform_3(%arg0: i32, %arg1: memref<2xi32, #tpu.memory_space<smem>>) -> (i32, i32, i32) {
    %c0_i32 = arith.constant 0 : i32
    %c0_i32_0 = arith.constant 0 : i32
    %c0_i32_1 = arith.constant 0 : i32
    return %arg0, %c0_i32, %c0_i32_0 : i32, i32, i32
  }
}

</mosaic_0001>

<bundles_post_ra>
// kernel: tpu_custom_call.1
= control target key start
LH: loop header
LB: loop body
LE: loop exit
PB: predicated region body
PF: predicated region fallthrough
CT: control target
= control target key end

     0   :  { %s665_s15 = smov [#allocation3]   ;;  %s933_s0 = inlined_call_operand.hbm [shape: s32[2], index: 0, kind: input, shape index: {}]   ;;  %s934_s1 = inlined_call_operand.hbm [shape: f32[2,4,256], index: 1, kind: input, shape index: {}]   ;;  %s935_s2 = inlined_call_operand.hbm [shape: f32[2,4,64], index: 2, kind: input, shape index: {}]   ;;  %s936_s3 = inlined_call_operand.hbm [shape: f32[2,8,256], index: 3, kind: output, shape index: {0}]   ;;  %s937_s4 = inlined_call_operand.hbm [shape: f32[2,8,64], index: 4, kind: output, shape index: {1}]  }
   0x1   :  { %11 = dma.hbm_to_smem %s933_s0, 16, %s665_s15, [#allocation2] }
   0x2   :  { %631 = dma.done.wait [#allocation2], 16 }
   0x3   :  { %632 = vsyncadd [#allocation2], 4294967280 }
   0x4   :  { %13 = sfence }
   0x5   :  { %14 = vsyncpa [#allocation5], 0 }
   0x6   :  { %16 = vsyncpa [#allocation5 + $0x1], 0 }
   0x7   :  { %17 = vsyncpa [#allocation8], 0 }
   0x8   :  { %19 = vsyncpa [#allocation8 + $0x1], 0 }
   0x9   :  { %20 = vsyncpa [#allocation6], 0 }
   0xa   :  { %22 = vsyncpa [#allocation6 + $0x1], 0 }
   0xb   :  { %23 = vsyncpa [#allocation11], 0 }
   0xc   :  { %25 = vsyncpa [#allocation11 + $0x1], 0  ;;  %s699_s18 = smov 0   ;;  %s701_s19 = smov 0  }
   0xd   :  { %s703_s20 = smov 0   ;;  %s705_s21 = smov 0  }
   0xe LB: > { %s720_s0 = sadd.s32 4294967295, %s663_s21   ;;  %s417_s22 = sadd.s32 4294967294, %s663_s21   ;;  %s663_s21 = sphi %s705_s21, %s956_s21   ;;  %s659_s20 = sphi %s703_s20, %s955_s20   ;;  %s655_s19 = sphi %s701_s19, %s954_s19   ;;  %s651_s18 = sphi %s699_s18, %s953_s18  }
   0xf   : > { %s724_s23 = sadd.s32 1, %s663_s21   ;;  %s38_s24 = sadd.s32 1, %s659_s20 }
  0x10   : > { %s35_s25 = ssub.s32 %s663_s21, %s724_s23  ;;  %p45_p0 = scmp.ne.s32.totalorder %s659_s20, %s655_s19 }
  0x11   : > { %p36_p1 = scmp.eq.s32.totalorder %s35_s25, 0  ;;  %p46_p2 = scmp.eq.s32.totalorder %s663_s21, 0 }
  0x12   : > { %p51_p3 = scmp.ne.s32.totalorder %s655_s19, %s651_s18  ;;  %p52_p4 = scmp.eq.s32.totalorder %s720_s0, 0 }
  0x13   : > { %s736_s26 = scalar_select %p36_p1, %s659_s20, %s38_s24  }
  0x14   : > { %p738_p5 = por %p46_p2, %p45_p0  ;;  %p742_p6 = por %p52_p4, %p51_p3 }
  0x15   : > { %p101_p7 = scmp.eq.s32.totalorder %s720_s0, 1  ;;  %p107_p8 = scmp.eq.s32.totalorder %s417_s22, 1 }
  0x16   : > { %s941_s28 = scalar_select %p742_p6, 1, 0 }
  0x17   : > { %p462_p10 = scmp.lt.s32.totalorder %s663_s21, 2  ;;  %p749_p11 = por %p101_p7, %p45_p0 }
  0x18   : > { %p753_p12 = por %p107_p8, %p51_p3  ;;  %s758_s5 = sand.u32 1, %s659_s20  }
  0x19   : > { %s942_s29 = scalar_select %p749_p11, 1, 0 }
  0x1a   : > { %s943_s30 = scalar_select %p753_p12, 1, 0 }
  0x1b   : > { %s438_s6 = sshll.u32 %s663_s21, 7  ;;  %s420_s7 = sshll.u32 %s758_s5, 3 }
  0x1c   : > { %s765_s10 = scalar_lea.hbm %s934_s1, %s438_s6  ;;  %s157_s11 = scalar_lea.vmem [#allocation4], %s420_s7 }
  0x1d   : > { %s165_s12 = sshll.u32 %s157_s11, 4  ;;  %p769_p13 = pnand %p462_p10, %p738_p5  ;;  %s773_s12 = int_to_ptr.vmem [resolvable:$true] %s165_s12 }
  0x1e   : > { %s154_s14 = scalar_lea.sflag [#allocation5], %s758_s5  ;;  %s507_s15 = scalar_lea.hbm %s765_s10, 128 }
  0x1f   : > { %p508_p2 = scmp.ne.s32.totalorder %s765_s10, %s507_s15  ;;  %p509_p3 = pneg %p769_p13 }
  0x20   : > { %s512_s22 = scalar_lea.hbm %s934_s1, 256  ;;  %p513_p5 = scmp.lt.s32.totalorder %s765_s10, %s934_s1 }
  0x21   : > { %p510_p4 = pnand %p509_p3, %p508_p2  ;;  %p514_p8 = scmp.lt.s32.totalorder %s512_s22, %s507_s15 }
  0x23   : > { %p511_p7 = pneg %p510_p4  ;;  %p515_p10 = por %p514_p8, %p513_p5 }
  0x25   : > { %p516_p9 = pnand %p515_p10, %p511_p7 }
  0x27   : > { %519 = shalt.err (!%p516_p9)
}
  0x28   : > { %s520_s27 = scalar_lea.vmem %s773_s12, 128  ;;  %s666_s6 = smov [#allocation4]  }
  0x29   : > { %p521_p0 = scmp.ne.s32.totalorder %s773_s12, %s520_s27  ;;  %s525_s7 = sshll.u32 %s666_s6, 4  ;;  %s526_s7 = int_to_ptr.vmem [resolvable:$false] %s525_s7 }
  0x2a   : > { %s527_s8 = scalar_lea.vmem %s526_s7, 256  ;;  %p528_p1 = scmp.lt.s32.totalorder %s773_s12, %s526_s7 }
  0x2b   : > { %p523_p2 = pnand %p521_p0, %p509_p3  ;;  %p529_p12 = scmp.lt.s32.totalorder %s527_s8, %s520_s27 }
  0x2d   : > { %p524_p4 = pneg %p523_p2  ;;  %p530_p11 = por %p529_p12, %p528_p1 }
  0x2f   : > { %p531_p5 = pnand %p530_p11, %p524_p4 }
  0x31   : > { %534 = shalt.err (!%p531_p5)
}
  0x32   : > { %451 = dma.hbm_to_vmem [thread:$0]  (!%p769_p13), %s765_s10, 128, %s773_s12, %s154_s14  }
  0x33   : > { %p945_p9 = scmp.lt.s32.totalorder %s663_s21, 3  ;;  %p946_p0 = scmp.ge.s32.totalorder %s663_s21, 1 }
  0x34   : > { %s423_s11 = sshll.u32 %s758_s5, 2  ;;  %s424_s15 = sshll.u32 %s663_s21, 6 }
  0x35   : > { %p806_p7 = pnand %p946_p0, %p945_p9  ;;  %s815_s22 = scalar_lea.hbm %s935_s2, %s424_s15 }
  0x36   : > { %s176_s24 = scalar_lea.vmem [#allocation7], %s423_s11  ;;  %s173_s10 = scalar_lea.sflag [#allocation8], %s758_s5 }
  0x37   : > { %s947_s9 = scalar_select %p806_p7, 1, 0 }
  0x38   : > { %s183_s25 = sshll.u32 %s176_s24, 4  ;;  %s535_s12 = scalar_lea.hbm %s815_s22, 64  ;;  %s184_s25 = int_to_ptr.vmem [resolvable:$true] %s183_s25 }
  0x39   : > { %p536_p11 = scmp.ne.s32.totalorder %s815_s22, %s535_s12  ;;  %s540_s6 = scalar_lea.hbm %s935_s2, 128 }
  0x3a   : > { %p541_p8 = scmp.lt.s32.totalorder %s815_s22, %s935_s2  ;;  %p542_p10 = scmp.lt.s32.totalorder %s540_s6, %s535_s12 }
  0x3b   : > { %p538_p12 = pnand %p536_p11, %p509_p3 }
  0x3c   : > { %p543_p2 = por %p542_p10, %p541_p8 }
  0x3d   : > { %p539_p1 = pneg %p538_p12 }
  0x3f   : > { %p544_p4 = pnand %p543_p2, %p539_p1 }
  0x41   : > { %547 = shalt.err (!%p544_p4)
}
  0x42   : > { %s548_s11 = scalar_lea.vmem %s184_s25, 64  ;;  %s667_s5 = smov [#allocation7]  }
  0x43   : > { %p549_p5 = scmp.ne.s32.totalorder %s184_s25, %s548_s11  ;;  %s553_s15 = sshll.u32 %s667_s5, 4  ;;  %s554_s15 = int_to_ptr.vmem [resolvable:$false] %s553_s15 }
  0x44   : > { %s555_s16 = scalar_lea.vmem %s554_s15, 128  ;;  %p556_p11 = scmp.lt.s32.totalorder %s184_s25, %s554_s15 }
  0x45   : > { %p551_p9 = pnand %p549_p5, %p509_p3  ;;  %p557_p12 = scmp.lt.s32.totalorder %s555_s16, %s548_s11 }
  0x47   : > { %p552_p0 = pneg %p551_p9  ;;  %p558_p6 = por %p557_p12, %p556_p11 }
  0x49   : > { %p559_p7 = pnand %p558_p6, %p552_p0 }
  0x4b   : > { %562 = shalt.err (!%p559_p7)
}
  0x4c   : > { %454 = dma.hbm_to_vmem [thread:$0]  (!%p769_p13), %s815_s22, 64, %s184_s25, %s173_s10  }
  0x4d   : > { %p948_p1 = scmp.ne.s32.totalorder %s947_s9, 0 }
  0x4e   : > { %s839_s17 = sand.u32 (!%p948_p1), 1, %s655_s19   ;;  %p949_p3 = scmp.ne.s32.totalorder (!%p948_p1), %s941_s28, 0 }
  0x4f   : > { %192 = sbr.rel (%p948_p1) target bundleno = 138 (0x8a), region = 28  ;;  %s426_s24 = sshll.u32 (!%p948_p1), %s839_s17, 3 }
  0x50   : > { %s195_s12 = scalar_lea.sflag (!%p948_p1), [#allocation5], %s839_s17  ;;  %s198_s14 = scalar_lea.vmem (!%p948_p1), [#allocation4], %s426_s24 }
  0x54   : > { %634 = dma.done.wait (%p949_p3), %s195_s12, 128  }
  0x55   : > { %636 = vsyncadd (%p949_p3), %s195_s12, 4294967168  ;;  %s427_s13 = sshll.u32 %s839_s17, 2  ;;  %s204_s9 = scalar_lea.sflag [#allocation8], %s839_s17 }
  0x56   : > { %s207_s22 = scalar_lea.vmem [#allocation7], %s427_s13 }
  0x57   : > { %638 = dma.done.wait (%p949_p3), %s204_s9, 64  }
  0x58   : > { %640 = vsyncadd (%p949_p3), %s204_s9, 4294967232  ;;  %s428_s25 = sshll.u32 %s839_s17, 4  ;;  %v241_v0 = vlaneseq  ;;  %s240_s10 = sld [smem:[#allocation3 + %s720_s0]]  ;;  %vm255_vm0 = vcmask 519168   ;;  %v249_v3 = vld [vmem:[%s198_s14] sm:$0xff]  ;;  %v668_v6 = vmov 0.0  }
  0x59   : > { %s232_s27 = scalar_lea.vmem [#allocation9], %s428_s25  ;;  %s239_s7 = scalar_lea.vmem [#allocation10], %s426_s24  ;;  %v257_v4 = vld [vmem:[%s207_s22] sm:$0xf]  ;;  %v251_v5 = vcombine.low %v249_v3, %v249_v3 }
  0x5a   : > { %v242_v1 = vshrl.u32 %v241_v0, 7  ;;  %s279_s6 = sshll.u32 %s232_s27, 4  ;;  %s292_s8 = sshll.u32 %s239_s7, 4  ;;  %254 = vst [vmem:[%s232_s27 + $0x8] sm:$0xf0] %v249_v3  ;;  %s857_s6 = int_to_ptr.vmem [resolvable:$true] %s279_s6  ;;  %s859_s8 = int_to_ptr.vmem [resolvable:$true] %s292_s8 }
  0x5b   : > { %s439_s11 = sshll.u32 %s720_s0, 8  ;;  %s435_s5 = sshll.u32 %s720_s0, 7  ;;  %258 = vst.msk [vmem:[%s239_s7 + $0x4] sm:$0xf] %vm255_vm0, %v257_v4  ;;  %253 = vst [vmem:[%s232_s27] sm:$0xf0] %v251_v5 }
  0x5c   : > { %s865_s0 = scalar_lea.hbm %s936_s3, %s439_s11  ;;  %s870_s12 = scalar_lea.hbm %s937_s4, %s435_s5 }
  0x5d   : > { %s260_s14 = scalar_lea.sflag [#allocation6], %s839_s17  ;;  %s563_s13 = scalar_lea.vmem %s857_s6, 256 }
  0x5e   : > { %v243_v2 = vstv %s240_s10  ;;  %p564_p6 = scmp.ne.s32.totalorder %s857_s6, %s563_s13  ;;  %p950_p13 = scmp.ne.s32.totalorder %s942_s29, 0 }
  0x5f   : > { %vm244_vm1 = vcmp.eq.s32.totalorder %v242_v1, %v243_v2  ;;  %s669_s9 = smov [#allocation9]  }
  0x60   : > { %v430_v7 = vsel %vm244_vm1, 1.0, %v668_v6  ;;  %p565_p7 = pnand %p564_p6, %p950_p13  ;;  %s567_s22 = sshll.u32 %s669_s9, 4  ;;  %s568_s22 = int_to_ptr.vmem [resolvable:$false] %s567_s22 }
  0x61   : > { %247 = vst [vmem:[%s232_s27] sm:$0xf] %v430_v7  ;;  %248 = vst [vmem:[%s232_s27 + $0x8] sm:$0xf] %v430_v7  ;;  %s569_s25 = scalar_lea.vmem %s568_s22, 512  ;;  %p570_p10 = scmp.lt.s32.totalorder %s857_s6, %s568_s22 }
  0x62   : > { %256 = vst.msk [vmem:[%s239_s7] sm:$0xf] %vm255_vm0, %v430_v7  ;;  %p566_p8 = pneg %p565_p7  ;;  %p571_p2 = scmp.lt.s32.totalorder %s569_s25, %s563_s13 }
  0x64   : > { %p572_p4 = por %p571_p2, %p570_p10 }
  0x66   : > { %p573_p5 = pnand %p572_p4, %p566_p8 }
  0x68   : > { %576 = shalt.err (!%p573_p5)
}
  0x69   : > { %s577_s10 = scalar_lea.hbm %s865_s0, 256  ;;  %s581_s11 = scalar_lea.hbm %s936_s3, 512 }
  0x6a   : > { %p578_p9 = scmp.ne.s32.totalorder %s865_s0, %s577_s10  ;;  %p582_p12 = scmp.lt.s32.totalorder %s865_s0, %s936_s3 }
  0x6b   : > { %p583_p1 = scmp.lt.s32.totalorder %s581_s11, %s577_s10 }
  0x6c   : > { %p579_p0 = pnand %p578_p9, %p950_p13 }
  0x6d   : > { %p584_p3 = por %p583_p1, %p582_p12 }
  0x6e   : > { %p580_p11 = pneg %p579_p0 }
  0x70   : > { %p585_p6 = pnand %p584_p3, %p580_p11 }
  0x72   : > { %588 = shalt.err (!%p585_p6)
}
  0x73   : > { %444 = dma.vmem_to_hbm [thread:$0]  (%p950_p13), %s857_s6, 256, %s865_s0, %s260_s14  }
  0x74   : > { %s265_s15 = scalar_lea.sflag [#allocation11], %s839_s17  ;;  %s589_s16 = scalar_lea.vmem %s859_s8, 128 }
  0x75   : > { %p590_p7 = scmp.ne.s32.totalorder %s859_s8, %s589_s16  ;;  %s670_s24 = smov [#allocation10]  }
  0x76   : > { %s593_s13 = sshll.u32 %s670_s24, 4  ;;  %s594_s13 = int_to_ptr.vmem [resolvable:$false] %s593_s13 }
  0x77   : > { %p591_p8 = pnand %p590_p7, %p950_p13  ;;  %s595_s9 = scalar_lea.vmem %s594_s13, 256 }
  0x78   : > { %p596_p2 = scmp.lt.s32.totalorder %s859_s8, %s594_s13  ;;  %p597_p4 = scmp.lt.s32.totalorder %s595_s9, %s589_s16 }
  0x79   : > { %p592_p10 = pneg %p591_p8 }
  0x7a   : > { %p598_p5 = por %p597_p4, %p596_p2 }
  0x7c   : > { %p599_p9 = pnand %p598_p5, %p592_p10 }
  0x7e   : > { %602 = shalt.err (!%p599_p9)
}
  0x7f   : > { %s603_s6 = scalar_lea.hbm %s870_s12, 128  ;;  %s607_s14 = scalar_lea.hbm %s937_s4, 256 }
  0x80   : > { %p604_p0 = scmp.ne.s32.totalorder %s870_s12, %s603_s6  ;;  %p608_p1 = scmp.lt.s32.totalorder %s870_s12, %s937_s4 }
  0x81   : > { %p609_p3 = scmp.lt.s32.totalorder %s607_s14, %s603_s6 }
  0x82   : > { %p605_p11 = pnand %p604_p0, %p950_p13 }
  0x83   : > { %p610_p6 = por %p609_p3, %p608_p1 }
  0x84   : > { %p606_p12 = pneg %p605_p11 }
  0x86   : > { %p611_p7 = pnand %p610_p6, %p606_p12 }
  0x88   : > { %614 = shalt.err (!%p611_p7)
}
  0x89   : > { %445 = dma.vmem_to_hbm [thread:$0]  (%p950_p13), %s859_s8, 128, %s870_s12, %s265_s15  }
  0x8a PF: > { %s304_s10 = sand.u32 1, %s651_s18   ;;  %p951_p8 = scmp.ne.s32.totalorder %s943_s30, 0 }
  0x8b   : > { %p952_p10 = scmp.ge.s32.totalorder %s663_s21, 2  ;;  %s305_s27 = scalar_lea.sflag [#allocation6], %s304_s10 }
  0x8d   : > { %p456_p2 = pnand %p952_p10, %p951_p8 }
  0x8f   : > { %p457_p4 = pneg %p456_p2 }
  0x91   : > { %642 = dma.done.wait (%p457_p4), %s305_s27, 256  }
  0x92   : > { %644 = vsyncadd (%p457_p4), %s305_s27, 4294967040  ;;  %s314_s7 = scalar_lea.sflag [#allocation11], %s304_s10 }
  0x93   : > { %646 = dma.done.wait (%p457_p4), %s314_s7, 128  }
  0x94   : > { %648 = vsyncadd (%p457_p4), %s314_s7, 4294967168  ;;  %p28_p13 = scmp.ge.s32.totalorder %s724_s23, 4   ;;  %s953_s18 = smov %s655_s19 }
  0x95   : > { %s954_s19 = smov %s659_s20  ;;  %s955_s20 = smov %s736_s26 }
  0x96   : > { %s956_s21 = smov %s724_s23  ;;  %30 = sbr.rel (!%p28_p13) target bundleno = 14 (0xe), region = 103 }
  0x9b   :  { %319 = vsyncpa [#allocation5], 1 }
  0x9c   :  { %321 = vsyncpa [#allocation5 + $0x1], 1 }
  0x9d   :  { %322 = vsyncpa [#allocation8], 1 }
  0x9e   :  { %324 = vsyncpa [#allocation8 + $0x1], 1 }
  0x9f   :  { %325 = vsyncpa [#allocation6], 1 }
  0xa0   :  { %327 = vsyncpa [#allocation6 + $0x1], 1 }
  0xa1   :  { %328 = vsyncpa [#allocation11], 1 }
  0xa2   :  { %330 = vsyncpa [#allocation11 + $0x1], 1 }

</bundles_post_ra>
